<compile_context>
chip_gen: v5e
topology: v5e:2x2
jax: 0.10.0
libtpu: 0.0.40
codegen_flags: <defaults>
</compile_context>

<pallas_src>
import numpy as np

import jax
import jax.numpy as jnp
from jax.experimental import pallas as pl
from jax.experimental.pallas import tpu as pltpu


# ---------------------------------------------------------------------------
# Pallas kernels
# ---------------------------------------------------------------------------
def _gridmask_mul_kernel(x_ref, m_ref, o_ref):
    # x_ref: [TL, HW], m_ref: [1, HW] (broadcast over sublanes), o_ref: [TL, HW]
    o_ref[...] = x_ref[...] * m_ref[...]


def _gridmask_offset_kernel(x_ref, m_ref, a_ref, o_ref):
    # out = x * mask + offset * (1 - mask); a_ref holds offset*(1-mask), [1, HW]
    o_ref[...] = x_ref[...] * m_ref[...] + a_ref[...]


# ---------------------------------------------------------------------------
# Tiling / wrapper
# ---------------------------------------------------------------------------
def _round_up(x, m):
    return ((x + m - 1) // m) * m


def _pick_tile_rows(n_rows, row_bytes, vmem_budget_bytes=24 << 20):
    """Largest sublane-aligned (multiple-of-8) row tile under the VMEM budget."""
    # 4x = double-buffered input block + double-buffered output block.
    max_rows = vmem_budget_bytes // max(1, 4 * row_bytes)
    max_rows = max(8, min(2048, (max_rows // 8) * 8))
    return min(_round_up(n_rows, 8), max_rows)


def gridmask_apply(x, mask_hw, offset_hw=None):
    """Apply a GridMask mask (and optional offset blend) with a fused Pallas kernel.

    x:         [n, c, h, w] float32
    mask_hw:   [h, w] float32 (mode==1 inversion already folded in)
    offset_hw: optional [h, w] float32 offset image (module's `offset=True` path)
    """
    n, c, h, w = x.shape
    N, HW = n * c, h * w
    xf = x.reshape(N, HW)
    mf = jnp.asarray(mask_hw, dtype=x.dtype).reshape(1, HW)

    row_bytes = HW * x.dtype.itemsize
    tile_rows = _pick_tile_rows(N, row_bytes)
    N_pad = _round_up(N, tile_rows)
    if N_pad != N:
        xf = jnp.pad(xf, ((0, N_pad - N), (0, 0)))
    grid = (N_pad // tile_rows,)

    x_spec = pl.BlockSpec((tile_rows, HW), lambda i: (i, 0))
    m_spec = pl.BlockSpec((1, HW), lambda i: (0, 0))
    a_spec = pl.BlockSpec((1, HW), lambda i: (0, 0))
    out_spec = pl.BlockSpec((tile_rows, HW), lambda i: (i, 0))

    # Explicit VMEM budget: 2x (pipelining) for input+output blocks plus the mask
    # rows, clamped to a range that is safe on v5e/v6e (128 MiB) and v7x (64 MiB).
    needed = 4 * tile_rows * row_bytes + 4 * HW * x.dtype.itemsize + (1 << 20)
    vmem_limit = int(min(max(needed, 8 << 20), 32 << 20))
    cparams = pltpu.CompilerParams(
        dimension_semantics=("parallel",),
        vmem_limit_bytes=vmem_limit,
    )

    if offset_hw is None:
        out = pl.pallas_call(
            _gridmask_mul_kernel,
            out_shape=jax.ShapeDtypeStruct((N_pad, HW), x.dtype),
            grid=grid,
            in_specs=[x_spec, m_spec],
            out_specs=out_spec,
            compiler_params=cparams,
        )(xf, mf)
    else:
        add = (jnp.asarray(offset_hw, dtype=x.dtype)
               * (1.0 - jnp.asarray(mask_hw, dtype=x.dtype))).reshape(1, HW)
        out = pl.pallas_call(
            _gridmask_offset_kernel,
            out_shape=jax.ShapeDtypeStruct((N_pad, HW), x.dtype),
            grid=grid,
            in_specs=[x_spec, m_spec, a_spec],
            out_specs=out_spec,
            compiler_params=cparams,
        )(xf, mf, add)

    if N_pad != N:
        out = out[:N]
    return out.reshape(n, c, h, w)


# ---------------------------------------------------------------------------
# Host-side mask construction (closed form of the PyTorch stripe loops)
# ---------------------------------------------------------------------------
def make_gridmask_mask(h, w, d, st_h, st_w, *, ratio=0.5,
                       use_h=True, use_w=True, mode=0):
    """Build the cropped [h, w] GridMask mask for rotation angle 0.

    Equivalent to the module's numpy stripe loops + center crop; rotate=1 in the
    module always draws angle r=0, so the rotation is the identity here.
    """
    # TODO(synk): PIL Image.rotate for rotate > 1 (arbitrary-angle image rotation)
    # has no clean Pallas/JAX equivalent; only the default rotate=1 (angle 0) path
    # is implemented.
    hh, ww = int(1.5 * h), int(1.5 * w)
    l = min(max(int(d * ratio + 0.5), 1), d - 1)
    del_h, del_w = (hh - h) // 2, (ww - w) // 2

    jr = np.arange(h) + del_h              # row coords of the crop in the full mask
    jc = np.arange(w) + del_w
    qr = jr - st_h
    qc = jc - st_w
    row_hit = (qr >= 0) & ((qr % d) < l) & (qr < d * (hh // d))
    col_hit = (qc >= 0) & ((qc % d) < l) & (qc < d * (ww // d))

    zero = np.zeros((h, w), dtype=bool)
    if use_h:
        zero |= row_hit[:, None]
    if use_w:
        zero |= col_hit[None, :]
    mask = np.where(zero, 0.0, 1.0).astype(np.float32)
    if mode == 1:
        mask = 1.0 - mask
    return jnp.asarray(mask)


# ---------------------------------------------------------------------------
# Reference: literal translation of the PyTorch forward (numpy stripe loops)
# ---------------------------------------------------------------------------
def gridmask_ref(x, d, st_h, st_w, *, ratio=0.5, use_h=True, use_w=True,
                 mode=0, offset_img=None):
    n, c, h, w = x.shape
    hh, ww = int(1.5 * h), int(1.5 * w)
    l = min(max(int(d * ratio + 0.5), 1), d - 1)
    mask = np.ones((hh, ww), np.float32)
    if use_h:
        for i in range(hh // d):
            s = d * i + st_h
            t = min(s + l, hh)
            mask[s:t, :] *= 0
    if use_w:
        for i in range(ww // d):
            s = d * i + st_w
            t = min(s + l, ww)
            mask[:, s:t] *= 0
    # rotate=1 -> np.random.randint(1) == 0 -> identity rotation
    mask = mask[(hh - h) // 2:(hh - h) // 2 + h, (ww - w) // 2:(ww - w) // 2 + w]
    if mode == 1:
        mask = 1.0 - mask
    mask = jnp.asarray(mask)
    out = x * mask[None, None, :, :]
    if offset_img is not None:
        out = out + jnp.asarray(offset_img)[None, None, :, :] * (1.0 - mask[None, None, :, :])
    return out


# ---------------------------------------------------------------------------
if __name__ == "__main__":
    key = jax.random.PRNGKey(0)
    n, c, h, w = 2, 4, 16, 16
    kx, kd, ksh, ksw, koff, kx2 = jax.random.split(key, 6)

    x = jax.random.normal(kx, (n, c, h, w), dtype=jnp.float32)

    # Deterministic "random" GridMask parameters, same ranges as the module.
    d = int(jax.random.randint(kd, (), 2, h))        # d in [2, h)
    st_h = int(jax.random.randint(ksh, (), 0, d))    # st_h in [0, d)
    st_w = int(jax.random.randint(ksw, (), 0, d))    # st_w in [0, d)

    # Host-side probability / training gate, as in the original module.
    prob, training = 1.0, True
    apply_mask = training and (float(np.random.default_rng(0).random()) <= prob)

    # ---- default path: use_h=use_w=True, mode=0, offset=False ----
    mask = make_gridmask_mask(h, w, d, st_h, st_w, ratio=0.5,
                              use_h=True, use_w=True, mode=0)
    out = gridmask_apply(x, mask) if apply_mask else x
    out = jax.block_until_ready(out)

    ref = gridmask_ref(x, d, st_h, st_w, ratio=0.5, use_h=True, use_w=True, mode=0)
    assert out.shape == (n, c, h, w), out.shape
    if not jnp.allclose(out, ref, atol=1e-6, rtol=1e-6):
        raise AssertionError("Pallas GridMask output does not match reference")

    # ---- offset=True path: x*mask + offset*(1-mask) ----
    offset_img = 2.0 * (jax.random.uniform(koff, (h, w), jnp.float32) - 0.5)
    out_off = gridmask_apply(x, mask, offset_hw=offset_img)
    out_off = jax.block_until_ready(out_off)
    ref_off = gridmask_ref(x, d, st_h, st_w, ratio=0.5, use_h=True, use_w=True,
                           mode=0, offset_img=offset_img)
    if not jnp.allclose(out_off, ref_off, atol=1e-5, rtol=1e-5):
        raise AssertionError("Pallas GridMask (offset) output does not match reference")

    # ---- padding path: n*c not a multiple of the sublane tile ----
    n2, c2 = 3, 5                                    # N = 15 -> padded to 16
    x2 = jax.random.normal(kx2, (n2, c2, h, w), dtype=jnp.float32)
    out2 = jax.block_until_ready(gridmask_apply(x2, mask))
    ref2 = gridmask_ref(x2, d, st_h, st_w, ratio=0.5, use_h=True, use_w=True, mode=0)
    if not jnp.allclose(out2, ref2, atol=1e-6, rtol=1e-6):
        raise AssertionError("Pallas GridMask (padded rows) output does not match reference")

    print("KERNEL_OK")
</pallas_src>

<mosaic_0001>
module attributes {stable_mosaic.version = 11 : i64} {
  func.func @_gridmask_mul_kernel(%arg0: i32, %arg1: memref<8x256xf32, #tpu.memory_space<vmem>>, %arg2: memref<1x256xf32, #tpu.memory_space<vmem>>, %arg3: memref<8x256xf32, #tpu.memory_space<vmem>>) attributes {dimension_semantics = [#tpu.dimension_semantics<parallel>], iteration_bounds = array<i64: 1>, scalar_prefetch = 0 : i64, scratch_operands = 0 : i64, tpu.core_type = #tpu.core_type<tc>, window_params = [{transform_indices = @transform_0, window_bounds = array<i64: 8, 256>}, {pipeline_mode = #tpu.pipeline_mode<synchronous>, transform_indices = @transform_1, window_bounds = array<i64: 1, 256>}, {transform_indices = @transform_2, window_bounds = array<i64: 8, 256>}]} {
    %c0 = arith.constant 0 : index
    %c0_0 = arith.constant 0 : index
    %0 = vector.load %arg1[%c0, %c0_0] : memref<8x256xf32, #tpu.memory_space<vmem>>, vector<8x256xf32>
    %c0_1 = arith.constant 0 : index
    %c0_2 = arith.constant 0 : index
    %1 = vector.load %arg2[%c0_1, %c0_2] : memref<1x256xf32, #tpu.memory_space<vmem>>, vector<1x256xf32>
    %2 = vector.broadcast %1 : vector<1x256xf32> to vector<8x256xf32>
    %3 = arith.mulf %0, %2 : vector<8x256xf32>
    %c0_3 = arith.constant 0 : index
    %c0_4 = arith.constant 0 : index
    %4 = vector.load %arg3[%c0_3, %c0_4] : memref<8x256xf32, #tpu.memory_space<vmem>>, vector<8x256xf32>
    tpu.vector_store %arg3[%c0_3, %c0_4], %3 {strides = array<i32>} : memref<8x256xf32, #tpu.memory_space<vmem>>, vector<8x256xf32>,
    return
  }
  func.func @transform_0(%arg0: i32) -> (i32, i32) {
    %c0_i32 = arith.constant 0 : i32
    %c0_i32_0 = arith.constant 0 : i32
    return %arg0, %c0_i32 : i32, i32
  }
  func.func @transform_1(%arg0: i32) -> (i32, i32) {
    %c0_i32 = arith.constant 0 : i32
    %c0_i32_0 = arith.constant 0 : i32
    %c0_i32_1 = arith.constant 0 : i32
    return %c0_i32, %c0_i32_0 : i32, i32
  }
  func.func @transform_2(%arg0: i32) -> (i32, i32) {
    %c0_i32 = arith.constant 0 : i32
    %c0_i32_0 = arith.constant 0 : i32
    return %arg0, %c0_i32 : i32, i32
  }
}

</mosaic_0001>

<bundles_post_ra>
// kernel: tpu_custom_call.1
= control target key start
LH: loop header
LB: loop body
LE: loop exit
PB: predicated region body
PF: predicated region fallthrough
CT: control target
= control target key end

     0   :  { %7 = vsyncpa [#allocation3], 0  ;;  %s178_s0 = inlined_call_operand.hbm [shape: f32[8,256], index: 0, kind: input, shape index: {}]   ;;  %s179_s1 = inlined_call_operand.hbm [shape: f32[1,256], index: 1, kind: input, shape index: {}]   ;;  %s180_s2 = inlined_call_operand.hbm [shape: f32[8,256], index: 2, kind: output, shape index: {}]  }
   0x1   :  { %8 = vsyncpa [#allocation6], 0 }
   0x2   :  { %9 = vsyncpa [#allocation4], 0  ;;  %s15_s11 = sshll.u32 %s178_s0, 4  ;;  %s151_s12 = smov [#allocation2]   ;;  %s16_s11 = int_to_ptr.hbm [resolvable:$true] %s15_s11 }
   0x3   :  { %s17_s13 = sshll.u32 %s151_s12, 4  ;;  %s26_s16 = sshll.u32 %s179_s1, 4  ;;  %s18_s13 = int_to_ptr.vmem [resolvable:$true] %s17_s13  ;;  %s27_s16 = int_to_ptr.hbm [resolvable:$true] %s26_s16 }
   0x4   :  { %20 = dma.hbm_to_vmem [thread:$0]  %s16_s11, 256, %s18_s13, [#allocation3]  }
   0x5   :  { %s152_s17 = smov [#allocation5]  }
   0x6   :  { %s28_s18 = sshll.u32 %s152_s17, 4  ;;  %s29_s18 = int_to_ptr.vmem [resolvable:$true] %s28_s18 }
   0x7   :  { %31 = dma.hbm_to_vmem [thread:$0]  %s27_s16, 32, %s29_s18, [#allocation6]  }
   0x8   :  { %145 = dma.done.wait [#allocation3], 256  }
   0x9   :  { %146 = vsyncadd [#allocation3], 4294967040 }
   0xa   :  { %147 = dma.done.wait [#allocation6], 32  }
   0xb   :  { %148 = vsyncadd [#allocation6], 4294967264  ;;  %v40_v0 = vld [vmem:[#allocation2] sm:$0xff]  ;;  %v42_v1 = vld [vmem:[#allocation5] sm:$0x3]  ;;  %s153_s0 = smov [#allocation7]  }
   0xc   :  { %v41_v2 = vld [vmem:[#allocation2 + $0x8] sm:$0xff]  ;;  %v44_v3 = vperm.slane %v42_v1, 0  ;;  %v45_v4 = vperm.slane %v42_v1, 1  ;;  %s57_s19 = sshll.u32 %s153_s0, 4  ;;  %s59_s1 = sshll.u32 %s180_s2, 4  ;;  %s58_s19 = int_to_ptr.vmem [resolvable:$true] %s57_s19  ;;  %s60_s1 = int_to_ptr.hbm [resolvable:$true] %s59_s1 }
   0xe   :  { %v48_v5 = vmul.f32 %v44_v3, %v40_v0  ;;  %v49_v6 = vmul.f32 %v45_v4, %v41_v2 }
  0x10   :  { %50 = vst [vmem:[#allocation7] sm:$0xff] %v48_v5 }
  0x11   :  { %51 = vst [vmem:[#allocation7 + $0x8] sm:$0xff] %v49_v6 }
  0x12   :  { %62 = dma.vmem_to_hbm [thread:$0]  %s58_s19, 256, %s60_s1, [#allocation4]  }
  0x13   :  { %149 = dma.done.wait [#allocation4], 256  }
  0x14   :  { %150 = vsyncadd [#allocation4], 4294967040 }
  0x15   :  { %67 = vsyncpa [#allocation3], 1 }
  0x16   :  { %68 = vsyncpa [#allocation6], 1 }
  0x17   :  { %69 = vsyncpa [#allocation4], 1 }

</bundles_post_ra>
